<compile_context>
chip_gen: v5e
topology: v5e:2x2
jax: 0.10.0
libtpu: 0.0.40
codegen_flags: <defaults>
</compile_context>

<pallas_src>
import functools

import jax
import jax.numpy as jnp
from jax import lax
from jax.experimental import pallas as pl
from jax.experimental.pallas import tpu as pltpu

_LANE = 128
_SUBLANE = 8


def _round_up(n, k):
    return ((n + k - 1) // k) * k


def _pad_to(a, shape):
    return jnp.pad(a, [(0, s - d) for d, s in zip(a.shape, shape)])


def _drrnn_kernel(depth, unroll,
                  x_ref, w_in_ref, b_in_ref,
                  wb1_ref, bb1_ref, wb2_ref, bb2_ref,
                  w_out_ref, b_out_ref,
                  o_ref):
    # MXU operand dtype follows the (possibly bf16) weights; accumulation is f32.
    cdt = w_in_ref.dtype

    # Input projection: (TB, in_N) @ (in_N, m_p) + (1, m_p)   (f32 result)
    h = jnp.dot(x_ref[...].astype(cdt), w_in_ref[...],
                preferred_element_type=jnp.float32) + b_in_ref[...]

    def block(d, h):
        t1 = jnp.tanh(jnp.dot(h.astype(cdt), wb1_ref[d],
                              preferred_element_type=jnp.float32) + bb1_ref[d])
        t2 = jnp.tanh(jnp.dot(t1.astype(cdt), wb2_ref[d],
                              preferred_element_type=jnp.float32) + bb2_ref[d])
        return t2 + h

    if unroll:
        # Small depth: static unroll (LLO scheduler sees everything).
        for d in range(depth):
            h = block(d, h)
    else:
        # Large depth: bounded live ranges, dynamic leading-axis weight indexing.
        h = lax.fori_loop(0, depth, block, h)

    # Output projection: (TB, m_p) @ (m_p, out_p) + (1, out_p)
    out = jnp.dot(h.astype(cdt), w_out_ref[...],
                  preferred_element_type=jnp.float32) + b_out_ref[...]
    o_ref[...] = out.astype(o_ref.dtype)


def drrnn_forward(x, params, *, depth, tile_b=None, weight_dtype=None):
    """x: (B, in_N) float32. params: dict of pre-transposed f32 weights/biases.

    weight_dtype: optional dtype (e.g. jnp.bfloat16) for the weight matrices;
    biases / accumulation / tanh / residual stay float32.
    """
    B, in_N = x.shape
    m = params["w_in"].shape[1]
    out_N = params["w_out"].shape[1]

    # Lane-dense feature padding.
    m_p = _round_up(m, _LANE)
    out_p = _round_up(out_N, _LANE)

    # Batch tile: whole (8-aligned) batch for small problems, 512 rows otherwise.
    if tile_b is None:
        tile_b = _round_up(B, _SUBLANE) if B <= 512 else 512
    tile_b = _round_up(tile_b, _SUBLANE)
    B_p = _round_up(B, tile_b)
    grid = (B_p // tile_b,)

    # Zero-pad inputs / weights (padded rows/cols contribute exactly zero).
    x_p = _pad_to(x, (B_p, in_N))
    w_in = _pad_to(params["w_in"], (in_N, m_p))
    b_in = _pad_to(params["b_in"], (1, m_p))
    wb1 = _pad_to(params["wb1"], (depth, m_p, m_p))
    bb1 = _pad_to(params["bb1"], (depth, 1, m_p))
    wb2 = _pad_to(params["wb2"], (depth, m_p, m_p))
    bb2 = _pad_to(params["bb2"], (depth, 1, m_p))
    w_out = _pad_to(params["w_out"], (m_p, out_p))
    b_out = _pad_to(params["b_out"], (1, out_p))

    if weight_dtype is not None:
        w_in, wb1, wb2, w_out = (w.astype(weight_dtype)
                                 for w in (w_in, wb1, wb2, w_out))

    unroll = depth <= 4
    kernel = functools.partial(_drrnn_kernel, depth, unroll)

    args = (x_p, w_in, b_in, wb1, bb1, wb2, bb2, w_out, b_out)

    # VMEM budget estimate: resident weights (worst case double-buffered) +
    # double-buffered x/out tiles + a few activation-sized temporaries.
    wbytes = sum(int(a.size) * a.dtype.itemsize
                 for a in (w_in, b_in, wb1, bb1, wb2, bb2, w_out, b_out))
    io_bytes = 2 * (tile_b * in_N + tile_b * out_p) * x.dtype.itemsize
    tmp_bytes = 4 * tile_b * m_p * 4
    est = 2 * wbytes + 2 * io_bytes + tmp_bytes
    vmem_limit = int(max(32 << 20, min(96 << 20, est)))

    def build(weight_buffers):
        def wspec(a):
            kw = {}
            if weight_buffers == 1:
                # Grid-invariant: single buffer, no prefetch needed.
                kw["pipeline_mode"] = pl.Buffered(1)
            return pl.BlockSpec(a.shape, lambda i, _nd=a.ndim: (0,) * _nd, **kw)

        return pl.pallas_call(
            kernel,
            out_shape=jax.ShapeDtypeStruct((B_p, out_p), x.dtype),
            grid=grid,
            in_specs=[
                pl.BlockSpec((tile_b, in_N), lambda i: (i, 0)),   # x tile
                wspec(w_in), wspec(b_in),                         # input proj
                wspec(wb1), wspec(bb1), wspec(wb2), wspec(bb2),   # residual blocks
                wspec(w_out), wspec(b_out),                       # output proj
            ],
            out_specs=pl.BlockSpec((tile_b, out_p), lambda i: (i, 0)),
            compiler_params=pltpu.CompilerParams(
                dimension_semantics=("parallel",),
                vmem_limit_bytes=vmem_limit),
        )

    try:
        out = build(1)(*args)
    except Exception:
        # This JAX build rejects single-buffered BlockSpecs -> default buffering.
        out = build(2)(*args)

    return out[:B, :out_N]


def init_params(key, in_N, m, out_N, depth):
    """Deterministic init mimicking nn.Linear default (uniform +-1/sqrt(fan_in)).
    Weights are stored already transposed to (in_features, out_features)."""
    ks = jax.random.split(key, 4 + 4 * depth)
    it = iter(ks)

    def lin(kw, kb, fan_in, fan_out):
        bound = 1.0 / jnp.sqrt(fan_in)
        w = jax.random.uniform(kw, (fan_in, fan_out), jnp.float32, -bound, bound)
        b = jax.random.uniform(kb, (1, fan_out), jnp.float32, -bound, bound)
        return w, b

    w_in, b_in = lin(next(it), next(it), in_N, m)

    wb1, bb1, wb2, bb2 = [], [], [], []
    for _ in range(depth):
        w1, b1 = lin(next(it), next(it), m, m)
        w2, b2 = lin(next(it), next(it), m, m)
        wb1.append(w1); bb1.append(b1)
        wb2.append(w2); bb2.append(b2)

    w_out, b_out = lin(next(it), next(it), m, out_N)

    return {
        "w_in": w_in, "b_in": b_in,
        "wb1": jnp.stack(wb1), "bb1": jnp.stack(bb1),
        "wb2": jnp.stack(wb2), "bb2": jnp.stack(bb2),
        "w_out": w_out, "b_out": b_out,
    }


def drrnn_reference(x, params, depth):
    h = x @ params["w_in"] + params["b_in"]
    for d in range(depth):
        t1 = jnp.tanh(h @ params["wb1"][d] + params["bb1"][d])
        t2 = jnp.tanh(t1 @ params["wb2"][d] + params["bb2"][d])
        h = t2 + h
    return h @ params["w_out"] + params["b_out"]


if __name__ == "__main__":
    in_N, m, out_N, depth = 4, 32, 2, 1
    batch = 16

    key = jax.random.PRNGKey(0)
    kx, kp = jax.random.split(key)
    x = jax.random.normal(kx, (batch, in_N), jnp.float32)
    params = init_params(kp, in_N, m, out_N, depth)
    y_ref = drrnn_reference(x, params, depth)

    # 1) f32 weights, whole batch in one grid step, lane-padded features.
    y = jax.block_until_ready(drrnn_forward(x, params, depth=depth))
    assert y.shape == (batch, out_N)
    assert jnp.allclose(y, y_ref, atol=1e-5, rtol=1e-5), "f32 mismatch vs reference"

    # 2) bf16 weights (v6e/v7x MXU-native); f32 accumulation -> loose tolerance.
    y_bf16 = jax.block_until_ready(
        drrnn_forward(x, params, depth=depth, weight_dtype=jnp.bfloat16))
    assert jnp.allclose(y_bf16, y_ref, atol=5e-2, rtol=5e-2), "bf16 mismatch vs reference"

    # 3) Deeper net exercises the lax.fori_loop (non-unrolled) path.
    depth2 = 6
    params2 = init_params(jax.random.PRNGKey(1), in_N, m, out_N, depth2)
    y2 = jax.block_until_ready(drrnn_forward(x, params2, depth=depth2))
    y2_ref = drrnn_reference(x, params2, depth2)
    assert jnp.allclose(y2, y2_ref, atol=1e-5, rtol=1e-5), "deep mismatch vs reference"

    print("KERNEL_OK")
</pallas_src>

<mosaic_0001>
module attributes {stable_mosaic.version = 11 : i64} {
  func.func @_drrnn_kernel(%arg0: i32, %arg1: memref<16x4xf32, #tpu.memory_space<vmem>>, %arg2: memref<4x128xf32, #tpu.memory_space<vmem>>, %arg3: memref<1x128xf32, #tpu.memory_space<vmem>>, %arg4: memref<1x128x128xf32, #tpu.memory_space<vmem>>, %arg5: memref<1x1x128xf32, #tpu.memory_space<vmem>>, %arg6: memref<1x128x128xf32, #tpu.memory_space<vmem>>, %arg7: memref<1x1x128xf32, #tpu.memory_space<vmem>>, %arg8: memref<128x128xf32, #tpu.memory_space<vmem>>, %arg9: memref<1x128xf32, #tpu.memory_space<vmem>>, %arg10: memref<16x128xf32, #tpu.memory_space<vmem>>) attributes {dimension_semantics = [#tpu.dimension_semantics<parallel>], iteration_bounds = array<i64: 1>, scalar_prefetch = 0 : i64, scratch_operands = 0 : i64, tpu.core_type = #tpu.core_type<tc>, window_params = [{transform_indices = @transform_0, window_bounds = array<i64: 16, 4>}, {pipeline_mode = #tpu.pipeline_mode<synchronous>, transform_indices = @transform_1, window_bounds = array<i64: 4, 128>}, {pipeline_mode = #tpu.pipeline_mode<synchronous>, transform_indices = @transform_2, window_bounds = array<i64: 1, 128>}, {pipeline_mode = #tpu.pipeline_mode<synchronous>, transform_indices = @transform_3, window_bounds = array<i64: 1, 128, 128>}, {pipeline_mode = #tpu.pipeline_mode<synchronous>, transform_indices = @transform_4, window_bounds = array<i64: 1, 1, 128>}, {pipeline_mode = #tpu.pipeline_mode<synchronous>, transform_indices = @transform_5, window_bounds = array<i64: 1, 128, 128>}, {pipeline_mode = #tpu.pipeline_mode<synchronous>, transform_indices = @transform_6, window_bounds = array<i64: 1, 1, 128>}, {pipeline_mode = #tpu.pipeline_mode<synchronous>, transform_indices = @transform_7, window_bounds = array<i64: 128, 128>}, {pipeline_mode = #tpu.pipeline_mode<synchronous>, transform_indices = @transform_8, window_bounds = array<i64: 1, 128>}, {transform_indices = @transform_9, window_bounds = array<i64: 16, 128>}]} {
    %c0 = arith.constant 0 : index
    %c0_0 = arith.constant 0 : index
    %0 = vector.load %arg1[%c0, %c0_0] : memref<16x4xf32, #tpu.memory_space<vmem>>, vector<16x4xf32>
    %c0_1 = arith.constant 0 : index
    %c0_2 = arith.constant 0 : index
    %1 = vector.load %arg2[%c0_1, %c0_2] : memref<4x128xf32, #tpu.memory_space<vmem>>, vector<4x128xf32>
    %cst = arith.constant dense<0.000000e+00> : vector<16x128xf32>
    %2 = tpu.matmul %0, %1, %cst {dimension_numbers = #tpu.dot_dimension_numbers<[1], [0], [0], [1], [0, 0, 1, 1], [], []>} : vector<16x4xf32>, vector<4x128xf32>, vector<16x128xf32> -> vector<16x128xf32>
    %c0_3 = arith.constant 0 : index
    %c0_4 = arith.constant 0 : index
    %3 = vector.load %arg3[%c0_3, %c0_4] : memref<1x128xf32, #tpu.memory_space<vmem>>, vector<1x128xf32>
    %4 = vector.broadcast %3 : vector<1x128xf32> to vector<16x128xf32>
    %5 = arith.addf %2, %4 : vector<16x128xf32>
    %c0_5 = arith.constant 0 : index
    %c0_6 = arith.constant 0 : index
    %c0_7 = arith.constant 0 : index
    %6 = vector.load %arg4[%c0_5, %c0_6, %c0_7] : memref<1x128x128xf32, #tpu.memory_space<vmem>>, vector<1x128x128xf32>
    %7 = vector.shape_cast %6 : vector<1x128x128xf32> to vector<128x128xf32>
    %cst_8 = arith.constant dense<0.000000e+00> : vector<16x128xf32>
    %8 = tpu.matmul %5, %7, %cst_8 {dimension_numbers = #tpu.dot_dimension_numbers<[1], [0], [0], [1], [0, 0, 1, 1], [], []>} : vector<16x128xf32>, vector<128x128xf32>, vector<16x128xf32> -> vector<16x128xf32>
    %c0_9 = arith.constant 0 : index
    %c0_10 = arith.constant 0 : index
    %c0_11 = arith.constant 0 : index
    %9 = vector.load %arg5[%c0_9, %c0_10, %c0_11] : memref<1x1x128xf32, #tpu.memory_space<vmem>>, vector<1x1x128xf32>
    %10 = vector.shape_cast %9 : vector<1x1x128xf32> to vector<1x128xf32>
    %11 = vector.broadcast %10 : vector<1x128xf32> to vector<16x128xf32>
    %12 = arith.addf %8, %11 : vector<16x128xf32>
    %13 = math.tanh %12 : vector<16x128xf32>
    %c0_12 = arith.constant 0 : index
    %c0_13 = arith.constant 0 : index
    %c0_14 = arith.constant 0 : index
    %14 = vector.load %arg6[%c0_12, %c0_13, %c0_14] : memref<1x128x128xf32, #tpu.memory_space<vmem>>, vector<1x128x128xf32>
    %15 = vector.shape_cast %14 : vector<1x128x128xf32> to vector<128x128xf32>
    %cst_15 = arith.constant dense<0.000000e+00> : vector<16x128xf32>
    %16 = tpu.matmul %13, %15, %cst_15 {dimension_numbers = #tpu.dot_dimension_numbers<[1], [0], [0], [1], [0, 0, 1, 1], [], []>} : vector<16x128xf32>, vector<128x128xf32>, vector<16x128xf32> -> vector<16x128xf32>
    %c0_16 = arith.constant 0 : index
    %c0_17 = arith.constant 0 : index
    %c0_18 = arith.constant 0 : index
    %17 = vector.load %arg7[%c0_16, %c0_17, %c0_18] : memref<1x1x128xf32, #tpu.memory_space<vmem>>, vector<1x1x128xf32>
    %18 = vector.shape_cast %17 : vector<1x1x128xf32> to vector<1x128xf32>
    %19 = vector.broadcast %18 : vector<1x128xf32> to vector<16x128xf32>
    %20 = arith.addf %16, %19 : vector<16x128xf32>
    %21 = math.tanh %20 : vector<16x128xf32>
    %22 = arith.addf %21, %5 : vector<16x128xf32>
    %c0_19 = arith.constant 0 : index
    %c0_20 = arith.constant 0 : index
    %23 = vector.load %arg8[%c0_19, %c0_20] : memref<128x128xf32, #tpu.memory_space<vmem>>, vector<128x128xf32>
    %cst_21 = arith.constant dense<0.000000e+00> : vector<16x128xf32>
    %24 = tpu.matmul %22, %23, %cst_21 {dimension_numbers = #tpu.dot_dimension_numbers<[1], [0], [0], [1], [0, 0, 1, 1], [], []>} : vector<16x128xf32>, vector<128x128xf32>, vector<16x128xf32> -> vector<16x128xf32>
    %c0_22 = arith.constant 0 : index
    %c0_23 = arith.constant 0 : index
    %25 = vector.load %arg9[%c0_22, %c0_23] : memref<1x128xf32, #tpu.memory_space<vmem>>, vector<1x128xf32>
    %26 = vector.broadcast %25 : vector<1x128xf32> to vector<16x128xf32>
    %27 = arith.addf %24, %26 : vector<16x128xf32>
    %c0_24 = arith.constant 0 : index
    %c0_25 = arith.constant 0 : index
    %28 = vector.load %arg10[%c0_24, %c0_25] : memref<16x128xf32, #tpu.memory_space<vmem>>, vector<16x128xf32>
    tpu.vector_store %arg10[%c0_24, %c0_25], %27 {strides = array<i32>} : memref<16x128xf32, #tpu.memory_space<vmem>>, vector<16x128xf32>,
    return
  }
  func.func @transform_0(%arg0: i32) -> (i32, i32) {
    %c0_i32 = arith.constant 0 : i32
    %c0_i32_0 = arith.constant 0 : i32
    return %arg0, %c0_i32 : i32, i32
  }
  func.func @transform_1(%arg0: i32) -> (i32, i32) {
    %c0_i32 = arith.constant 0 : i32
    %c0_i32_0 = arith.constant 0 : i32
    %c0_i32_1 = arith.constant 0 : i32
    return %c0_i32, %c0_i32_0 : i32, i32
  }
  func.func @transform_2(%arg0: i32) -> (i32, i32) {
    %c0_i32 = arith.constant 0 : i32
    %c0_i32_0 = arith.constant 0 : i32
    %c0_i32_1 = arith.constant 0 : i32
    return %c0_i32, %c0_i32_0 : i32, i32
  }
  func.func @transform_3(%arg0: i32) -> (i32, i32, i32) {
    %c0_i32 = arith.constant 0 : i32
    %c0_i32_0 = arith.constant 0 : i32
    %c0_i32_1 = arith.constant 0 : i32
    %c0_i32_2 = arith.constant 0 : i32
    return %c0_i32, %c0_i32_0, %c0_i32_1 : i32, i32, i32
  }
  func.func @transform_4(%arg0: i32) -> (i32, i32, i32) {
    %c0_i32 = arith.constant 0 : i32
    %c0_i32_0 = arith.constant 0 : i32
    %c0_i32_1 = arith.constant 0 : i32
    %c0_i32_2 = arith.constant 0 : i32
    return %c0_i32, %c0_i32_0, %c0_i32_1 : i32, i32, i32
  }
  func.func @transform_5(%arg0: i32) -> (i32, i32, i32) {
    %c0_i32 = arith.constant 0 : i32
    %c0_i32_0 = arith.constant 0 : i32
    %c0_i32_1 = arith.constant 0 : i32
    %c0_i32_2 = arith.constant 0 : i32
    return %c0_i32, %c0_i32_0, %c0_i32_1 : i32, i32, i32
  }
  func.func @transform_6(%arg0: i32) -> (i32, i32, i32) {
    %c0_i32 = arith.constant 0 : i32
    %c0_i32_0 = arith.constant 0 : i32
    %c0_i32_1 = arith.constant 0 : i32
    %c0_i32_2 = arith.constant 0 : i32
    return %c0_i32, %c0_i32_0, %c0_i32_1 : i32, i32, i32
  }
  func.func @transform_7(%arg0: i32) -> (i32, i32) {
    %c0_i32 = arith.constant 0 : i32
    %c0_i32_0 = arith.constant 0 : i32
    %c0_i32_1 = arith.constant 0 : i32
    return %c0_i32, %c0_i32_0 : i32, i32
  }
  func.func @transform_8(%arg0: i32) -> (i32, i32) {
    %c0_i32 = arith.constant 0 : i32
    %c0_i32_0 = arith.constant 0 : i32
    %c0_i32_1 = arith.constant 0 : i32
    return %c0_i32, %c0_i32_0 : i32, i32
  }
  func.func @transform_9(%arg0: i32) -> (i32, i32) {
    %c0_i32 = arith.constant 0 : i32
    %c0_i32_0 = arith.constant 0 : i32
    return %arg0, %c0_i32 : i32, i32
  }
}

module attributes {stable_mosaic.version = 11 : i64} {
  func.func @_drrnn_kernel(%arg0: i32, %arg1: memref<16x4xf32, #tpu.memory_space<vmem>>, %arg2: memref<4x128xf32, #tpu.memory_space<vmem>>, %arg3: memref<1x128xf32, #tpu.memory_space<vmem>>, %arg4: memref<1x128x128xf32, #tpu.memory_space<vmem>>, %arg5: memref<1x1x128xf32, #tpu.memory_space<vmem>>, %arg6: memref<1x128x128xf32, #tpu.memory_space<vmem>>, %arg7: memref<1x1x128xf32, #tpu.memory_space<vmem>>, %arg8: memref<128x128xf32, #tpu.memory_space<vmem>>, %arg9: memref<1x128xf32, #tpu.memory_space<vmem>>, %arg10: memref<16x128xf32, #tpu.memory_space<vmem>>) attributes {dimension_semantics = [#tpu.dimension_semantics<parallel>], iteration_bounds = array<i64: 1>, scalar_prefetch = 0 : i64, scratch_operands = 0 : i64, tpu.core_type = #tpu.core_type<tc>, window_params = [{transform_indices = @transform_0, window_bounds = array<i64: 16, 4>}, {pipeline_mode = #tpu.pipeline_mode<synchronous>, transform_indices = @transform_1, window_bounds = array<i64: 4, 128>}, {pipeline_mode = #tpu.pipeline_mode<synchronous>, transform_indices = @transform_2, window_bounds = array<i64: 1, 128>}, {pipeline_mode = #tpu.pipeline_mode<synchronous>, transform_indices = @transform_3, window_bounds = array<i64: 1, 128, 128>}, {pipeline_mode = #tpu.pipeline_mode<synchronous>, transform_indices = @transform_4, window_bounds = array<i64: 1, 1, 128>}, {pipeline_mode = #tpu.pipeline_mode<synchronous>, transform_indices = @transform_5, window_bounds = array<i64: 1, 128, 128>}, {pipeline_mode = #tpu.pipeline_mode<synchronous>, transform_indices = @transform_6, window_bounds = array<i64: 1, 1, 128>}, {pipeline_mode = #tpu.pipeline_mode<synchronous>, transform_indices = @transform_7, window_bounds = array<i64: 128, 128>}, {pipeline_mode = #tpu.pipeline_mode<synchronous>, transform_indices = @transform_8, window_bounds = array<i64: 1, 128>}, {transform_indices = @transform_9, window_bounds = array<i64: 16, 128>}]} {
    %c0 = arith.constant 0 : index
    %c0_0 = arith.constant 0 : index
    %0 = vector.load %arg1[%c0, %c0_0] : memref<16x4xf32, #tpu.memory_space<vmem>>, vector<16x4xf32>
    %c0_1 = arith.constant 0 : index
    %c0_2 = arith.constant 0 : index
    %1 = vector.load %arg2[%c0_1, %c0_2] : memref<4x128xf32, #tpu.memory_space<vmem>>, vector<4x128xf32>
    %cst = arith.constant dense<0.000000e+00> : vector<16x128xf32>
    %2 = tpu.matmul %0, %1, %cst {dimension_numbers = #tpu.dot_dimension_numbers<[1], [0], [0], [1], [0, 0, 1, 1], [], []>} : vector<16x4xf32>, vector<4x128xf32>, vector<16x128xf32> -> vector<16x128xf32>
    %c0_3 = arith.constant 0 : index
    %c0_4 = arith.constant 0 : index
    %3 = vector.load %arg3[%c0_3, %c0_4] : memref<1x128xf32, #tpu.memory_space<vmem>>, vector<1x128xf32>
    %4 = vector.broadcast %3 : vector<1x128xf32> to vector<16x128xf32>
    %5 = arith.addf %2, %4 : vector<16x128xf32>
    %c0_5 = arith.constant 0 : index
    %c0_6 = arith.constant 0 : index
    %c0_7 = arith.constant 0 : index
    %6 = vector.load %arg4[%c0_5, %c0_6, %c0_7] : memref<1x128x128xf32, #tpu.memory_space<vmem>>, vector<1x128x128xf32>
    %7 = vector.shape_cast %6 : vector<1x128x128xf32> to vector<128x128xf32>
    %cst_8 = arith.constant dense<0.000000e+00> : vector<16x128xf32>
    %8 = tpu.matmul %5, %7, %cst_8 {dimension_numbers = #tpu.dot_dimension_numbers<[1], [0], [0], [1], [0, 0, 1, 1], [], []>} : vector<16x128xf32>, vector<128x128xf32>, vector<16x128xf32> -> vector<16x128xf32>
    %c0_9 = arith.constant 0 : index
    %c0_10 = arith.constant 0 : index
    %c0_11 = arith.constant 0 : index
    %9 = vector.load %arg5[%c0_9, %c0_10, %c0_11] : memref<1x1x128xf32, #tpu.memory_space<vmem>>, vector<1x1x128xf32>
    %10 = vector.shape_cast %9 : vector<1x1x128xf32> to vector<1x128xf32>
    %11 = vector.broadcast %10 : vector<1x128xf32> to vector<16x128xf32>
    %12 = arith.addf %8, %11 : vector<16x128xf32>
    %13 = math.tanh %12 : vector<16x128xf32>
    %c0_12 = arith.constant 0 : index
    %c0_13 = arith.constant 0 : index
    %c0_14 = arith.constant 0 : index
    %14 = vector.load %arg6[%c0_12, %c0_13, %c0_14] : memref<1x128x128xf32, #tpu.memory_space<vmem>>, vector<1x128x128xf32>
    %15 = vector.shape_cast %14 : vector<1x128x128xf32> to vector<128x128xf32>
    %cst_15 = arith.constant dense<0.000000e+00> : vector<16x128xf32>
    %16 = tpu.matmul %13, %15, %cst_15 {dimension_numbers = #tpu.dot_dimension_numbers<[1], [0], [0], [1], [0, 0, 1, 1], [], []>} : vector<16x128xf32>, vector<128x128xf32>, vector<16x128xf32> -> vector<16x128xf32>
    %c0_16 = arith.constant 0 : index
    %c0_17 = arith.constant 0 : index
    %c0_18 = arith.constant 0 : index
    %17 = vector.load %arg7[%c0_16, %c0_17, %c0_18] : memref<1x1x128xf32, #tpu.memory_space<vmem>>, vector<1x1x128xf32>
    %18 = vector.shape_cast %17 : vector<1x1x128xf32> to vector<1x128xf32>
    %19 = vector.broadcast %18 : vector<1x128xf32> to vector<16x128xf32>
    %20 = arith.addf %16, %19 : vector<16x128xf32>
    %21 = math.tanh %20 : vector<16x128xf32>
    %22 = arith.addf %21, %5 : vector<16x128xf32>
    %c0_19 = arith.constant 0 : index
    %c0_20 = arith.constant 0 : index
    %23 = vector.load %arg8[%c0_19, %c0_20] : memref<128x128xf32, #tpu.memory_space<vmem>>, vector<128x128xf32>
    %cst_21 = arith.constant dense<0.000000e+00> : vector<16x128xf32>
    %24 = tpu.matmul %22, %23, %cst_21 {dimension_numbers = #tpu.dot_dimension_numbers<[1], [0], [0], [1], [0, 0, 1, 1], [], []>} : vector<16x128xf32>, vector<128x128xf32>, vector<16x128xf32> -> vector<16x128xf32>
    %c0_22 = arith.constant 0 : index
    %c0_23 = arith.constant 0 : index
    %25 = vector.load %arg9[%c0_22, %c0_23] : memref<1x128xf32, #tpu.memory_space<vmem>>, vector<1x128xf32>
    %26 = vector.broadcast %25 : vector<1x128xf32> to vector<16x128xf32>
    %27 = arith.addf %24, %26 : vector<16x128xf32>
    %c0_24 = arith.constant 0 : index
    %c0_25 = arith.constant 0 : index
    %28 = vector.load %arg10[%c0_24, %c0_25] : memref<16x128xf32, #tpu.memory_space<vmem>>, vector<16x128xf32>
    tpu.vector_store %arg10[%c0_24, %c0_25], %27 {strides = array<i32>} : memref<16x128xf32, #tpu.memory_space<vmem>>, vector<16x128xf32>,
    return
  }
  func.func @transform_0(%arg0: i32) -> (i32, i32) {
    %c0_i32 = arith.constant 0 : i32
    %c0_i32_0 = arith.constant 0 : i32
    return %arg0, %c0_i32 : i32, i32
  }
  func.func @transform_1(%arg0: i32) -> (i32, i32) {
    %c0_i32 = arith.constant 0 : i32
    %c0_i32_0 = arith.constant 0 : i32
    %c0_i32_1 = arith.constant 0 : i32
    return %c0_i32, %c0_i32_0 : i32, i32
  }
  func.func @transform_2(%arg0: i32) -> (i32, i32) {
    %c0_i32 = arith.constant 0 : i32
    %c0_i32_0 = arith.constant 0 : i32
    %c0_i32_1 = arith.constant 0 : i32
    return %c0_i32, %c0_i32_0 : i32, i32
  }
  func.func @transform_3(%arg0: i32) -> (i32, i32, i32) {
    %c0_i32 = arith.constant 0 : i32
    %c0_i32_0 = arith.constant 0 : i32
    %c0_i32_1 = arith.constant 0 : i32
    %c0_i32_2 = arith.constant 0 : i32
    return %c0_i32, %c0_i32_0, %c0_i32_1 : i32, i32, i32
  }
  func.func @transform_4(%arg0: i32) -> (i32, i32, i32) {
    %c0_i32 = arith.constant 0 : i32
    %c0_i32_0 = arith.constant 0 : i32
    %c0_i32_1 = arith.constant 0 : i32
    %c0_i32_2 = arith.constant 0 : i32
    return %c0_i32, %c0_i32_0, %c0_i32_1 : i32, i32, i32
  }
  func.func @transform_5(%arg0: i32) -> (i32, i32, i32) {
    %c0_i32 = arith.constant 0 : i32
    %c0_i32_0 = arith.constant 0 : i32
    %c0_i32_1 = arith.constant 0 : i32
    %c0_i32_2 = arith.constant 0 : i32
    return %c0_i32, %c0_i32_0, %c0_i32_1 : i32, i32, i32
  }
  func.func @transform_6(%arg0: i32) -> (i32, i32, i32) {
    %c0_i32 = arith.constant 0 : i32
    %c0_i32_0 = arith.constant 0 : i32
    %c0_i32_1 = arith.constant 0 : i32
    %c0_i32_2 = arith.constant 0 : i32
    return %c0_i32, %c0_i32_0, %c0_i32_1 : i32, i32, i32
  }
  func.func @transform_7(%arg0: i32) -> (i32, i32) {
    %c0_i32 = arith.constant 0 : i32
    %c0_i32_0 = arith.constant 0 : i32
    %c0_i32_1 = arith.constant 0 : i32
    return %c0_i32, %c0_i32_0 : i32, i32
  }
  func.func @transform_8(%arg0: i32) -> (i32, i32) {
    %c0_i32 = arith.constant 0 : i32
    %c0_i32_0 = arith.constant 0 : i32
    %c0_i32_1 = arith.constant 0 : i32
    return %c0_i32, %c0_i32_0 : i32, i32
  }
  func.func @transform_9(%arg0: i32) -> (i32, i32) {
    %c0_i32 = arith.constant 0 : i32
    %c0_i32_0 = arith.constant 0 : i32
    return %arg0, %c0_i32 : i32, i32
  }
}

</mosaic_0001>

<bundles_post_ra>
// kernel: tpu_custom_call.1
= control target key start
LH: loop header
LB: loop body
LE: loop exit
PB: predicated region body
PF: predicated region fallthrough
CT: control target
= control target key end

     0   :  { %14 = vsyncpa [#allocation3], 0  ;;  %s528_s0 = inlined_call_operand.vmem [shape: f32[16,4], index: 0, kind: input, shape index: {}]   ;;  %s529_s1 = inlined_call_operand.vmem [shape: f32[4,128], index: 1, kind: input, shape index: {}]   ;;  %s530_s2 = inlined_call_operand.vmem [shape: f32[1,128], index: 2, kind: input, shape index: {}]   ;;  %s531_s3 = inlined_call_operand.hbm [shape: f32[1,128,128], index: 3, kind: input, shape index: {}]   ;;  %s532_s4 = inlined_call_operand.vmem [shape: f32[1,1,128], index: 4, kind: input, shape index: {}]   ;;  %s533_s5 = inlined_call_operand.hbm [shape: f32[1,128,128], index: 5, kind: input, shape index: {}]   ;;  %s534_s6 = inlined_call_operand.vmem [shape: f32[1,1,128], index: 6, kind: input, shape index: {}]   ;;  %s535_s7 = inlined_call_operand.hbm [shape: f32[128,128], index: 7, kind: input, shape index: {}]   ;;  %s536_s8 = inlined_call_operand.vmem [shape: f32[1,128], index: 8, kind: input, shape index: {}]   ;;  %s537_s9 = inlined_call_operand.hbm [shape: f32[16,128], index: 9, kind: output, shape index: {}]  }
   0x1   :  { %15 = vsyncpa [#allocation6], 0 }
   0x2   :  { %16 = vsyncpa [#allocation4], 0  ;;  %s42_s11 = sshll.u32 %s533_s5, 4  ;;  %s417_s12 = smov [#allocation5]   ;;  %s43_s11 = int_to_ptr.hbm [resolvable:$true] %s42_s11 }
   0x3   :  { %s44_s13 = sshll.u32 %s417_s12, 4  ;;  %s27_s16 = sshll.u32 %s531_s3, 4  ;;  %s45_s13 = int_to_ptr.vmem [resolvable:$true] %s44_s13  ;;  %s28_s16 = int_to_ptr.hbm [resolvable:$true] %s27_s16 }
   0x4   :  { %s418_s17 = smov 128   ;;  %s419_s18 = smov 8  }
   0x5   :  { %50 = dma.hbm_to_vmem [thread:$0]  %s43_s11, 2048, %s45_s13, [#allocation6], %s418_s17, %s418_s17, %s419_s18  }
   0x6   :  { %s420_s19 = smov [#allocation2]   ;;  %s57_s5 = sshll.u32 %s535_s7, 4  ;;  %s58_s5 = int_to_ptr.hbm [resolvable:$true] %s57_s5 }
   0x7   :  { %s29_s20 = sshll.u32 %s420_s19, 4  ;;  %s421_s3 = smov [#allocation7]   ;;  %s30_s20 = int_to_ptr.vmem [resolvable:$true] %s29_s20 }
   0x8   :  { %35 = dma.hbm_to_vmem [thread:$0]  %s28_s16, 2048, %s30_s20, [#allocation3], %s418_s17, %s418_s17, %s419_s18  }
   0x9   :  { %s59_s23 = sshll.u32 %s421_s3, 4  ;;  %s60_s23 = int_to_ptr.vmem [resolvable:$true] %s59_s23 }
   0xa   :  { %65 = dma.hbm_to_vmem [thread:$0]  %s58_s5, 2048, %s60_s23, [#allocation6], %s418_s17, %s418_s17, %s419_s18  }
   0xb   :  { %411 = dma.done.wait [#allocation3], 2048  }
   0xc   :  { %412 = vsyncadd [#allocation3], 4294965248 }
   0xd   :  { %413 = dma.done.wait [#allocation6], 4096  }
   0xe   :  { %414 = vsyncadd [#allocation6], 4294963200  ;;  %vm94_vm0 = vcmask 1043456   ;;  %vm87_vm1 = vcmask 31744   ;;  %v82_v0 = vld [vmem:[%s529_s1] sm:$0xf] }
   0xf   :  { %v80_v1 = vld [vmem:[%s528_s0] sm:$0xff]  ;;  %278 = vmatpush.msk.msra.mxu0 %vm94_vm0, %v82_v0  ;;  %v136_v2 = vld [vmem:[#allocation2 + $0x78] sm:$0xff]  ;;  %v135_v3 = vld [vmem:[#allocation2 + $0x70] sm:$0xff]  ;;  %s264_s15 = sshll.u32 %s537_s9, 4  ;;  %s265_s15 = int_to_ptr.hbm [resolvable:$true] %s264_s15 }
  0x10   :  { %279 = vmatmul.msk.f32.vlgmr.msra.gmra.mxu0 %vm87_vm1, %v80_v1  ;;  %281 = vmatpush.msra.mxu1 %v136_v2  ;;  %v134_v4 = vld [vmem:[#allocation2 + $0x68] sm:$0xff]  ;;  %v133_v5 = vld [vmem:[#allocation2 + $0x60] sm:$0xff]  ;;  %v132_v7 = vld [vmem:[#allocation2 + $0x58] sm:$0xff] }
  0x11   :  { %141 = vmatpush.msrb.mxu0 %v136_v2  ;;  %v81_v6 = vld [vmem:[%s528_s0 + $0x8] sm:$0xff]  ;;  %v131_v8 = vld [vmem:[#allocation2 + $0x50] sm:$0xff]  ;;  %v129_v10 = vld [vmem:[#allocation2 + $0x40] sm:$0xff] }
  0x12   :  { %282 = vmatpush.msra.mxu1 %v135_v3  ;;  %v130_v9 = vld [vmem:[#allocation2 + $0x48] sm:$0xff]  ;;  %v128_v11 = vld [vmem:[#allocation2 + $0x38] sm:$0xff]  ;;  %v127_v12 = vld [vmem:[#allocation2 + $0x30] sm:$0xff] }
  0x13   :  { %142 = vmatpush.msrb.mxu0 %v135_v3  ;;  %v126_v13 = vld [vmem:[#allocation2 + $0x28] sm:$0xff]  ;;  %v125_v14 = vld [vmem:[#allocation2 + $0x20] sm:$0xff]  ;;  %v124_v15 = vld [vmem:[#allocation2 + $0x18] sm:$0xff] }
  0x14   :  { %283 = vmatpush.msra.mxu1 %v134_v4  ;;  %v123_v16 = vld [vmem:[#allocation2 + $0x10] sm:$0xff]  ;;  %v122_v17 = vld [vmem:[#allocation2 + $0x8] sm:$0xff]  ;;  %v121_v18 = vld [vmem:[#allocation2] sm:$0xff] }
  0x15   :  { %143 = vmatpush.msrb.mxu0 %v134_v4  ;;  %v181_v19 = vld [vmem:[#allocation5 + $0x78] sm:$0xff]  ;;  %v180_v20 = vld [vmem:[#allocation5 + $0x70] sm:$0xff]  ;;  %v179_v21 = vld [vmem:[#allocation5 + $0x68] sm:$0xff] }
  0x16   :  { %284 = vmatpush.msra.mxu1 %v133_v5  ;;  %186 = vmatpush.msra.mxu2 %v181_v19  ;;  %v178_v22 = vld [vmem:[#allocation5 + $0x60] sm:$0xff]  ;;  %v177_v23 = vld [vmem:[#allocation5 + $0x58] sm:$0xff]  ;;  %v176_v24 = vld [vmem:[#allocation5 + $0x50] sm:$0xff] }
  0x17   :  { %144 = vmatpush.msrb.mxu0 %v133_v5  ;;  %v175_v25 = vld [vmem:[#allocation5 + $0x48] sm:$0xff]  ;;  %v174_v26 = vld [vmem:[#allocation5 + $0x40] sm:$0xff]  ;;  %v173_v27 = vld [vmem:[#allocation5 + $0x38] sm:$0xff] }
  0x18   :  { %280 = vmatmul.msk.f32.gmra.mxu0 %vm87_vm1, %v81_v6  ;;  %285 = vmatpush.msra.mxu1 %v132_v7  ;;  %v172_v28 = vld [vmem:[#allocation5 + $0x30] sm:$0xff]  ;;  %v303_v29 = vld [vmem:[%s530_s2] ss:$0 sm:$0xff]  ;;  %v171_v30 = vld [vmem:[#allocation5 + $0x28] sm:$0xff] }
  0x19   :  { %145 = vmatpush.msrb.mxu0 %v132_v7  ;;  %187 = vmatpush.msra.mxu2 %v180_v20  ;;  %v170_v35 = vld [vmem:[#allocation5 + $0x20] sm:$0xff]  ;;  %v169_v36 = vld [vmem:[#allocation5 + $0x18] sm:$0xff]  ;;  %v168_v37 = vld [vmem:[#allocation5 + $0x10] sm:$0xff] }
  0x1a   :  { %286 = vmatpush.msra.mxu1 %v131_v8  ;;  %v167_v38 = vld [vmem:[#allocation5 + $0x8] sm:$0xff]  ;;  %v166_v39 = vld [vmem:[#allocation5] sm:$0xff]  ;;  %v228_v40 = vld [vmem:[#allocation7 + $0x78] sm:$0xff] }
  0x1b   :  { %146 = vmatpush.msrb.mxu0 %v131_v8  ;;  %188 = vmatpush.msra.mxu2 %v179_v21  ;;  %v227_v41 = vld [vmem:[#allocation7 + $0x70] sm:$0xff]  ;;  %v226_v42 = vld [vmem:[#allocation7 + $0x68] sm:$0xff]  ;;  %v225_v43 = vld [vmem:[#allocation7 + $0x60] sm:$0xff] }
  0x1c   :  { %287 = vmatpush.msra.mxu1 %v130_v9  ;;  %233 = vmatpush.msra.mxu3 %v228_v40  ;;  %v224_v44 = vld [vmem:[#allocation7 + $0x58] sm:$0xff]  ;;  %v223_v45 = vld [vmem:[#allocation7 + $0x50] sm:$0xff]  ;;  %v222_v46 = vld [vmem:[#allocation7 + $0x48] sm:$0xff] }
  0x1d   :  { %147 = vmatpush.msrb.mxu0 %v130_v9  ;;  %189 = vmatpush.msra.mxu2 %v178_v22  ;;  %v304_v47 = vld [vmem:[%s532_s4] ss:$0 sm:$0xff]  ;;  %v220_v50 = vld [vmem:[#allocation7 + $0x38] sm:$0xff]  ;;  %v219_v52 = vld [vmem:[#allocation7 + $0x30] sm:$0xff] }
  0x1e   :  { %288 = vmatpush.msra.mxu1 %v129_v10  ;;  %234 = vmatpush.msra.mxu3 %v227_v41  ;;  %v221_v48 = vld [vmem:[#allocation7 + $0x40] sm:$0xff]  ;;  %v218_v57 = vld [vmem:[#allocation7 + $0x28] sm:$0xff]  ;;  %v216_v59 = vld [vmem:[#allocation7 + $0x18] sm:$0xff] }
  0x1f   :  { %148 = vmatpush.msrb.mxu0 %v129_v10  ;;  %190 = vmatpush.msra.mxu2 %v177_v23  ;;  %v217_v58 = vld [vmem:[#allocation7 + $0x20] sm:$0xff]  ;;  %v215_v60 = vld [vmem:[#allocation7 + $0x10] sm:$0xff]  ;;  %v214_v61 = vld [vmem:[#allocation7 + $0x8] sm:$0xff] }
  0x20   :  { %289 = vmatpush.msra.mxu1 %v128_v11  ;;  %235 = vmatpush.msra.mxu3 %v226_v42  ;;  %v213_v62 = vld [vmem:[#allocation7] sm:$0xff] }
  0x21   :  { %149 = vmatpush.msrb.mxu0 %v128_v11  ;;  %191 = vmatpush.msra.mxu2 %v176_v24  ;;  %v305_v63 = vld [vmem:[%s534_s6] ss:$0 sm:$0xff]  ;;  %s422_s6 = smov [#allocation8]  }
  0x22   :  { %290 = vmatpush.msra.mxu1 %v127_v12  ;;  %236 = vmatpush.msra.mxu3 %v225_v43  ;;  %v306_v8 = vld [vmem:[%s536_s8] ss:$0 sm:$0xff]  ;;  %s262_s12 = sshll.u32 %s422_s6, 4  ;;  %s263_s12 = int_to_ptr.vmem [resolvable:$true] %s262_s12 }
  0x23   :  { %150 = vmatpush.msrb.mxu0 %v127_v12  ;;  %192 = vmatpush.msra.mxu2 %v175_v25 }
  0x24   :  { %291 = vmatpush.msra.mxu1 %v126_v13  ;;  %237 = vmatpush.msra.mxu3 %v224_v44 }
  0x25   :  { %151 = vmatpush.msrb.mxu0 %v126_v13  ;;  %193 = vmatpush.msra.mxu2 %v174_v26 }
  0x26   :  { %292 = vmatpush.msra.mxu1 %v125_v14  ;;  %238 = vmatpush.msra.mxu3 %v223_v45 }
  0x27   :  { %152 = vmatpush.msrb.mxu0 %v125_v14  ;;  %194 = vmatpush.msra.mxu2 %v173_v27 }
  0x28   :  { %293 = vmatpush.msra.mxu1 %v124_v15  ;;  %239 = vmatpush.msra.mxu3 %v222_v46 }
  0x29   :  { %153 = vmatpush.msrb.mxu0 %v124_v15  ;;  %195 = vmatpush.msra.mxu2 %v172_v28 }
  0x2a   :  { %294 = vmatpush.msra.mxu1 %v123_v16  ;;  %240 = vmatpush.msra.mxu3 %v221_v48 }
  0x2b   :  { %154 = vmatpush.msrb.mxu0 %v123_v16  ;;  %196 = vmatpush.msra.mxu2 %v171_v30 }
  0x2c   :  { %295 = vmatpush.msra.mxu1 %v122_v17  ;;  %241 = vmatpush.msra.mxu3 %v220_v50 }
  0x2d   :  { %155 = vmatpush.msrb.mxu0 %v122_v17  ;;  %197 = vmatpush.msra.mxu2 %v170_v35 }
  0x2e   :  { %296 = vmatpush.msra.mxu1 %v121_v18  ;;  %242 = vmatpush.msra.mxu3 %v219_v52 }
  0x2f   :  { %156 = vmatpush.msrb.mxu0 %v121_v18  ;;  %198 = vmatpush.msra.mxu2 %v169_v36 }
  0x30   :  { %243 = vmatpush.msra.mxu3 %v218_v57 }
  0x31   :  { %199 = vmatpush.msra.mxu2 %v168_v37 }
  0x32   :  { %244 = vmatpush.msra.mxu3 %v217_v58 }
  0x33   :  { %200 = vmatpush.msra.mxu2 %v167_v38 }
  0x34   :  { %245 = vmatpush.msra.mxu3 %v216_v59 }
  0x35   :  { %201 = vmatpush.msra.mxu2 %v166_v39 }
  0x36   :  { %246 = vmatpush.msra.mxu3 %v215_v60 }
  0x38   :  { %247 = vmatpush.msra.mxu3 %v214_v61 }
  0x3a   :  { %248 = vmatpush.msra.mxu3 %v213_v62 }
  0x8d   :  { %v115_v31 = vpop.f32.mrf.mxu0 }
  0x8e   :  { %v505_v32 = vadd.f32 %v303_v29, %v115_v31 }
  0x90   :  { %157 = vmatmul.f32.vlgmr.msrb.gmra.mxu0 %v505_v32 }
  0x95   :  { %v118_v33 = vpop.f32.mrf.mxu0 }
  0x96   :  { %v508_v34 = vadd.f32 %v303_v29, %v118_v33 }
  0x98   :  { %160 = vmatmul.f32.vlgmr.msra.gmra.mxu1 %v508_v34 }
 0x10d   :  { %v158_v49 = vpop.f32.mrf.mxu0 }
 0x10e   :  { %v159_v51 = vadd.f32 %v304_v47, %v158_v49 }
 0x110   :  { %307 = vtanh.f32 %v159_v51 }
 0x115   :  { %v161_v53 = vpop.f32.mrf.mxu1 }
 0x116   :  { %v308_v54 = vpop.eup %307  ;;  %v162_v55 = vadd.f32 %v304_v47, %v161_v53 }
 0x117   :  { %202 = vmatmul.f32.vlgmr.msra.gmra.mxu2 %v308_v54 }
 0x118   :  { %309 = vtanh.f32 %v162_v55 }
 0x11e   :  { %v310_v56 = vpop.eup %309 }
 0x11f   :  { %205 = vmatmul.f32.gmra.mxu2 %v310_v56 }
 0x19a   :  { %v203_v0 = vpop.f32.mrf.mxu2 }
 0x19b   :  { %v204_v1 = vadd.f32 %v305_v63, %v203_v0 }
 0x19d   :  { %311 = vtanh.f32 %v204_v1 }
 0x1a2   :  { %v206_v2 = vpop.f32.mrf.mxu2 }
 0x1a3   :  { %v312_v3 = vpop.eup %311  ;;  %v207_v4 = vadd.f32 %v305_v63, %v206_v2 }
 0x1a4   :  { %v211_v5 = vadd.f32 %v312_v3, %v505_v32 }
 0x1a5   :  { %313 = vtanh.f32 %v207_v4 }
 0x1a6   :  { %249 = vmatmul.f32.vlgmr.msra.gmra.mxu3 %v211_v5 }
 0x1ab   :  { %v314_v6 = vpop.eup %313 }
 0x1ac   :  { %v212_v7 = vadd.f32 %v314_v6, %v508_v34 }
 0x1ae   :  { %252 = vmatmul.f32.gmra.mxu3 %v212_v7 }
 0x229   :  { %v250_v9 = vpop.f32.mrf.mxu3 }
 0x22a   :  { %v251_v10 = vadd.f32 %v306_v8, %v250_v9 }
 0x22c   :  { %256 = vst [vmem:[#allocation8] sm:$0xff] %v251_v10 }
 0x231   :  { %v253_v11 = vpop.f32.mrf.mxu3 }
 0x232   :  { %v254_v12 = vadd.f32 %v306_v8, %v253_v11 }
 0x234   :  { %257 = vst [vmem:[#allocation8 + $0x8] sm:$0xff] %v254_v12 }
 0x235   :  { %270 = dma.vmem_to_hbm [thread:$0]  %s263_s12, 256, %s265_s15, [#allocation4], %s418_s17, %s418_s17, %s419_s18  }
 0x236   :  { %415 = dma.done.wait [#allocation4], 256  }
 0x237   :  { %416 = vsyncadd [#allocation4], 4294967040 }
 0x238   :  { %275 = vsyncpa [#allocation3], 1 }
 0x239   :  { %276 = vsyncpa [#allocation6], 1 }
 0x23a   :  { %277 = vsyncpa [#allocation4], 1 }

// kernel: tpu_custom_call.1
= control target key start
LH: loop header
LB: loop body
LE: loop exit
PB: predicated region body
PF: predicated region fallthrough
CT: control target
= control target key end

     0   :  { %14 = vsyncpa [#allocation3], 0  ;;  %s528_s0 = inlined_call_operand.vmem [shape: f32[16,4], index: 0, kind: input, shape index: {}]   ;;  %s529_s1 = inlined_call_operand.vmem [shape: f32[4,128], index: 1, kind: input, shape index: {}]   ;;  %s530_s2 = inlined_call_operand.vmem [shape: f32[1,128], index: 2, kind: input, shape index: {}]   ;;  %s531_s3 = inlined_call_operand.hbm [shape: f32[1,128,128], index: 3, kind: input, shape index: {}]   ;;  %s532_s4 = inlined_call_operand.vmem [shape: f32[1,1,128], index: 4, kind: input, shape index: {}]   ;;  %s533_s5 = inlined_call_operand.hbm [shape: f32[1,128,128], index: 5, kind: input, shape index: {}]   ;;  %s534_s6 = inlined_call_operand.vmem [shape: f32[1,1,128], index: 6, kind: input, shape index: {}]   ;;  %s535_s7 = inlined_call_operand.hbm [shape: f32[128,128], index: 7, kind: input, shape index: {}]   ;;  %s536_s8 = inlined_call_operand.vmem [shape: f32[1,128], index: 8, kind: input, shape index: {}]   ;;  %s537_s9 = inlined_call_operand.hbm [shape: f32[16,128], index: 9, kind: output, shape index: {}]  }
   0x1   :  { %15 = vsyncpa [#allocation6], 0 }
   0x2   :  { %16 = vsyncpa [#allocation4], 0  ;;  %s42_s11 = sshll.u32 %s533_s5, 4  ;;  %s417_s12 = smov [#allocation5]   ;;  %s43_s11 = int_to_ptr.hbm [resolvable:$true] %s42_s11 }
   0x3   :  { %s44_s13 = sshll.u32 %s417_s12, 4  ;;  %s27_s16 = sshll.u32 %s531_s3, 4  ;;  %s45_s13 = int_to_ptr.vmem [resolvable:$true] %s44_s13  ;;  %s28_s16 = int_to_ptr.hbm [resolvable:$true] %s27_s16 }
   0x4   :  { %s418_s17 = smov 128   ;;  %s419_s18 = smov 8  }
   0x5   :  { %50 = dma.hbm_to_vmem [thread:$0]  %s43_s11, 2048, %s45_s13, [#allocation6], %s418_s17, %s418_s17, %s419_s18  }
   0x6   :  { %s420_s19 = smov [#allocation2]   ;;  %s57_s5 = sshll.u32 %s535_s7, 4  ;;  %s58_s5 = int_to_ptr.hbm [resolvable:$true] %s57_s5 }
   0x7   :  { %s29_s20 = sshll.u32 %s420_s19, 4  ;;  %s421_s3 = smov [#allocation7]   ;;  %s30_s20 = int_to_ptr.vmem [resolvable:$true] %s29_s20 }
   0x8   :  { %35 = dma.hbm_to_vmem [thread:$0]  %s28_s16, 2048, %s30_s20, [#allocation3], %s418_s17, %s418_s17, %s419_s18  }
   0x9   :  { %s59_s23 = sshll.u32 %s421_s3, 4  ;;  %s60_s23 = int_to_ptr.vmem [resolvable:$true] %s59_s23 }
   0xa   :  { %65 = dma.hbm_to_vmem [thread:$0]  %s58_s5, 2048, %s60_s23, [#allocation6], %s418_s17, %s418_s17, %s419_s18  }
   0xb   :  { %411 = dma.done.wait [#allocation3], 2048  }
   0xc   :  { %412 = vsyncadd [#allocation3], 4294965248 }
   0xd   :  { %413 = dma.done.wait [#allocation6], 4096  }
   0xe   :  { %414 = vsyncadd [#allocation6], 4294963200  ;;  %vm94_vm0 = vcmask 1043456   ;;  %vm87_vm1 = vcmask 31744   ;;  %v82_v0 = vld [vmem:[%s529_s1] sm:$0xf] }
   0xf   :  { %v80_v1 = vld [vmem:[%s528_s0] sm:$0xff]  ;;  %278 = vmatpush.msk.msra.mxu0 %vm94_vm0, %v82_v0  ;;  %v136_v2 = vld [vmem:[#allocation2 + $0x78] sm:$0xff]  ;;  %v135_v3 = vld [vmem:[#allocation2 + $0x70] sm:$0xff]  ;;  %s264_s15 = sshll.u32 %s537_s9, 4  ;;  %s265_s15 = int_to_ptr.hbm [resolvable:$true] %s264_s15 }
  0x10   :  { %279 = vmatmul.msk.f32.vlgmr.msra.gmra.mxu0 %vm87_vm1, %v80_v1  ;;  %281 = vmatpush.msra.mxu1 %v136_v2  ;;  %v134_v4 = vld [vmem:[#allocation2 + $0x68] sm:$0xff]  ;;  %v133_v5 = vld [vmem:[#allocation2 + $0x60] sm:$0xff]  ;;  %v132_v7 = vld [vmem:[#allocation2 + $0x58] sm:$0xff] }
  0x11   :  { %141 = vmatpush.msrb.mxu0 %v136_v2  ;;  %v81_v6 = vld [vmem:[%s528_s0 + $0x8] sm:$0xff]  ;;  %v131_v8 = vld [vmem:[#allocation2 + $0x50] sm:$0xff]  ;;  %v129_v10 = vld [vmem:[#allocation2 + $0x40] sm:$0xff] }
  0x12   :  { %282 = vmatpush.msra.mxu1 %v135_v3  ;;  %v130_v9 = vld [vmem:[#allocation2 + $0x48] sm:$0xff]  ;;  %v128_v11 = vld [vmem:[#allocation2 + $0x38] sm:$0xff]  ;;  %v127_v12 = vld [vmem:[#allocation2 + $0x30] sm:$0xff] }
  0x13   :  { %142 = vmatpush.msrb.mxu0 %v135_v3  ;;  %v126_v13 = vld [vmem:[#allocation2 + $0x28] sm:$0xff]  ;;  %v125_v14 = vld [vmem:[#allocation2 + $0x20] sm:$0xff]  ;;  %v124_v15 = vld [vmem:[#allocation2 + $0x18] sm:$0xff] }
  0x14   :  { %283 = vmatpush.msra.mxu1 %v134_v4  ;;  %v123_v16 = vld [vmem:[#allocation2 + $0x10] sm:$0xff]  ;;  %v122_v17 = vld [vmem:[#allocation2 + $0x8] sm:$0xff]  ;;  %v121_v18 = vld [vmem:[#allocation2] sm:$0xff] }
  0x15   :  { %143 = vmatpush.msrb.mxu0 %v134_v4  ;;  %v181_v19 = vld [vmem:[#allocation5 + $0x78] sm:$0xff]  ;;  %v180_v20 = vld [vmem:[#allocation5 + $0x70] sm:$0xff]  ;;  %v179_v21 = vld [vmem:[#allocation5 + $0x68] sm:$0xff] }
  0x16   :  { %284 = vmatpush.msra.mxu1 %v133_v5  ;;  %186 = vmatpush.msra.mxu2 %v181_v19  ;;  %v178_v22 = vld [vmem:[#allocation5 + $0x60] sm:$0xff]  ;;  %v177_v23 = vld [vmem:[#allocation5 + $0x58] sm:$0xff]  ;;  %v176_v24 = vld [vmem:[#allocation5 + $0x50] sm:$0xff] }
  0x17   :  { %144 = vmatpush.msrb.mxu0 %v133_v5  ;;  %v175_v25 = vld [vmem:[#allocation5 + $0x48] sm:$0xff]  ;;  %v174_v26 = vld [vmem:[#allocation5 + $0x40] sm:$0xff]  ;;  %v173_v27 = vld [vmem:[#allocation5 + $0x38] sm:$0xff] }
  0x18   :  { %280 = vmatmul.msk.f32.gmra.mxu0 %vm87_vm1, %v81_v6  ;;  %285 = vmatpush.msra.mxu1 %v132_v7  ;;  %v172_v28 = vld [vmem:[#allocation5 + $0x30] sm:$0xff]  ;;  %v303_v29 = vld [vmem:[%s530_s2] ss:$0 sm:$0xff]  ;;  %v171_v30 = vld [vmem:[#allocation5 + $0x28] sm:$0xff] }
  0x19   :  { %145 = vmatpush.msrb.mxu0 %v132_v7  ;;  %187 = vmatpush.msra.mxu2 %v180_v20  ;;  %v170_v35 = vld [vmem:[#allocation5 + $0x20] sm:$0xff]  ;;  %v169_v36 = vld [vmem:[#allocation5 + $0x18] sm:$0xff]  ;;  %v168_v37 = vld [vmem:[#allocation5 + $0x10] sm:$0xff] }
  0x1a   :  { %286 = vmatpush.msra.mxu1 %v131_v8  ;;  %v167_v38 = vld [vmem:[#allocation5 + $0x8] sm:$0xff]  ;;  %v166_v39 = vld [vmem:[#allocation5] sm:$0xff]  ;;  %v228_v40 = vld [vmem:[#allocation7 + $0x78] sm:$0xff] }
  0x1b   :  { %146 = vmatpush.msrb.mxu0 %v131_v8  ;;  %188 = vmatpush.msra.mxu2 %v179_v21  ;;  %v227_v41 = vld [vmem:[#allocation7 + $0x70] sm:$0xff]  ;;  %v226_v42 = vld [vmem:[#allocation7 + $0x68] sm:$0xff]  ;;  %v225_v43 = vld [vmem:[#allocation7 + $0x60] sm:$0xff] }
  0x1c   :  { %287 = vmatpush.msra.mxu1 %v130_v9  ;;  %233 = vmatpush.msra.mxu3 %v228_v40  ;;  %v224_v44 = vld [vmem:[#allocation7 + $0x58] sm:$0xff]  ;;  %v223_v45 = vld [vmem:[#allocation7 + $0x50] sm:$0xff]  ;;  %v222_v46 = vld [vmem:[#allocation7 + $0x48] sm:$0xff] }
  0x1d   :  { %147 = vmatpush.msrb.mxu0 %v130_v9  ;;  %189 = vmatpush.msra.mxu2 %v178_v22  ;;  %v304_v47 = vld [vmem:[%s532_s4] ss:$0 sm:$0xff]  ;;  %v220_v50 = vld [vmem:[#allocation7 + $0x38] sm:$0xff]  ;;  %v219_v52 = vld [vmem:[#allocation7 + $0x30] sm:$0xff] }
  0x1e   :  { %288 = vmatpush.msra.mxu1 %v129_v10  ;;  %234 = vmatpush.msra.mxu3 %v227_v41  ;;  %v221_v48 = vld [vmem:[#allocation7 + $0x40] sm:$0xff]  ;;  %v218_v57 = vld [vmem:[#allocation7 + $0x28] sm:$0xff]  ;;  %v216_v59 = vld [vmem:[#allocation7 + $0x18] sm:$0xff] }
  0x1f   :  { %148 = vmatpush.msrb.mxu0 %v129_v10  ;;  %190 = vmatpush.msra.mxu2 %v177_v23  ;;  %v217_v58 = vld [vmem:[#allocation7 + $0x20] sm:$0xff]  ;;  %v215_v60 = vld [vmem:[#allocation7 + $0x10] sm:$0xff]  ;;  %v214_v61 = vld [vmem:[#allocation7 + $0x8] sm:$0xff] }
  0x20   :  { %289 = vmatpush.msra.mxu1 %v128_v11  ;;  %235 = vmatpush.msra.mxu3 %v226_v42  ;;  %v213_v62 = vld [vmem:[#allocation7] sm:$0xff] }
  0x21   :  { %149 = vmatpush.msrb.mxu0 %v128_v11  ;;  %191 = vmatpush.msra.mxu2 %v176_v24  ;;  %v305_v63 = vld [vmem:[%s534_s6] ss:$0 sm:$0xff]  ;;  %s422_s6 = smov [#allocation8]  }
  0x22   :  { %290 = vmatpush.msra.mxu1 %v127_v12  ;;  %236 = vmatpush.msra.mxu3 %v225_v43  ;;  %v306_v8 = vld [vmem:[%s536_s8] ss:$0 sm:$0xff]  ;;  %s262_s12 = sshll.u32 %s422_s6, 4  ;;  %s263_s12 = int_to_ptr.vmem [resolvable:$true] %s262_s12 }
  0x23   :  { %150 = vmatpush.msrb.mxu0 %v127_v12  ;;  %192 = vmatpush.msra.mxu2 %v175_v25 }
  0x24   :  { %291 = vmatpush.msra.mxu1 %v126_v13  ;;  %237 = vmatpush.msra.mxu3 %v224_v44 }
  0x25   :  { %151 = vmatpush.msrb.mxu0 %v126_v13  ;;  %193 = vmatpush.msra.mxu2 %v174_v26 }
  0x26   :  { %292 = vmatpush.msra.mxu1 %v125_v14  ;;  %238 = vmatpush.msra.mxu3 %v223_v45 }
  0x27   :  { %152 = vmatpush.msrb.mxu0 %v125_v14  ;;  %194 = vmatpush.msra.mxu2 %v173_v27 }
  0x28   :  { %293 = vmatpush.msra.mxu1 %v124_v15  ;;  %239 = vmatpush.msra.mxu3 %v222_v46 }
  0x29   :  { %153 = vmatpush.msrb.mxu0 %v124_v15  ;;  %195 = vmatpush.msra.mxu2 %v172_v28 }
  0x2a   :  { %294 = vmatpush.msra.mxu1 %v123_v16  ;;  %240 = vmatpush.msra.mxu3 %v221_v48 }
  0x2b   :  { %154 = vmatpush.msrb.mxu0 %v123_v16  ;;  %196 = vmatpush.msra.mxu2 %v171_v30 }
  0x2c   :  { %295 = vmatpush.msra.mxu1 %v122_v17  ;;  %241 = vmatpush.msra.mxu3 %v220_v50 }
  0x2d   :  { %155 = vmatpush.msrb.mxu0 %v122_v17  ;;  %197 = vmatpush.msra.mxu2 %v170_v35 }
  0x2e   :  { %296 = vmatpush.msra.mxu1 %v121_v18  ;;  %242 = vmatpush.msra.mxu3 %v219_v52 }
  0x2f   :  { %156 = vmatpush.msrb.mxu0 %v121_v18  ;;  %198 = vmatpush.msra.mxu2 %v169_v36 }
  0x30   :  { %243 = vmatpush.msra.mxu3 %v218_v57 }
  0x31   :  { %199 = vmatpush.msra.mxu2 %v168_v37 }
  0x32   :  { %244 = vmatpush.msra.mxu3 %v217_v58 }
  0x33   :  { %200 = vmatpush.msra.mxu2 %v167_v38 }
  0x34   :  { %245 = vmatpush.msra.mxu3 %v216_v59 }
  0x35   :  { %201 = vmatpush.msra.mxu2 %v166_v39 }
  0x36   :  { %246 = vmatpush.msra.mxu3 %v215_v60 }
  0x38   :  { %247 = vmatpush.msra.mxu3 %v214_v61 }
  0x3a   :  { %248 = vmatpush.msra.mxu3 %v213_v62 }
  0x8d   :  { %v115_v31 = vpop.f32.mrf.mxu0 }
  0x8e   :  { %v505_v32 = vadd.f32 %v303_v29, %v115_v31 }
  0x90   :  { %157 = vmatmul.f32.vlgmr.msrb.gmra.mxu0 %v505_v32 }
  0x95   :  { %v118_v33 = vpop.f32.mrf.mxu0 }
  0x96   :  { %v508_v34 = vadd.f32 %v303_v29, %v118_v33 }
  0x98   :  { %160 = vmatmul.f32.vlgmr.msra.gmra.mxu1 %v508_v34 }
 0x10d   :  { %v158_v49 = vpop.f32.mrf.mxu0 }
 0x10e   :  { %v159_v51 = vadd.f32 %v304_v47, %v158_v49 }
 0x110   :  { %307 = vtanh.f32 %v159_v51 }
 0x115   :  { %v161_v53 = vpop.f32.mrf.mxu1 }
 0x116   :  { %v308_v54 = vpop.eup %307  ;;  %v162_v55 = vadd.f32 %v304_v47, %v161_v53 }
 0x117   :  { %202 = vmatmul.f32.vlgmr.msra.gmra.mxu2 %v308_v54 }
 0x118   :  { %309 = vtanh.f32 %v162_v55 }
 0x11e   :  { %v310_v56 = vpop.eup %309 }
 0x11f   :  { %205 = vmatmul.f32.gmra.mxu2 %v310_v56 }
 0x19a   :  { %v203_v0 = vpop.f32.mrf.mxu2 }
 0x19b   :  { %v204_v1 = vadd.f32 %v305_v63, %v203_v0 }
 0x19d   :  { %311 = vtanh.f32 %v204_v1 }
 0x1a2   :  { %v206_v2 = vpop.f32.mrf.mxu2 }
 0x1a3   :  { %v312_v3 = vpop.eup %311  ;;  %v207_v4 = vadd.f32 %v305_v63, %v206_v2 }
 0x1a4   :  { %v211_v5 = vadd.f32 %v312_v3, %v505_v32 }
 0x1a5   :  { %313 = vtanh.f32 %v207_v4 }
 0x1a6   :  { %249 = vmatmul.f32.vlgmr.msra.gmra.mxu3 %v211_v5 }
 0x1ab   :  { %v314_v6 = vpop.eup %313 }
 0x1ac   :  { %v212_v7 = vadd.f32 %v314_v6, %v508_v34 }
 0x1ae   :  { %252 = vmatmul.f32.gmra.mxu3 %v212_v7 }
 0x229   :  { %v250_v9 = vpop.f32.mrf.mxu3 }
 0x22a   :  { %v251_v10 = vadd.f32 %v306_v8, %v250_v9 }
 0x22c   :  { %256 = vst [vmem:[#allocation8] sm:$0xff] %v251_v10 }
 0x231   :  { %v253_v11 = vpop.f32.mrf.mxu3 }
 0x232   :  { %v254_v12 = vadd.f32 %v306_v8, %v253_v11 }
 0x234   :  { %257 = vst [vmem:[#allocation8 + $0x8] sm:$0xff] %v254_v12 }
 0x235   :  { %270 = dma.vmem_to_hbm [thread:$0]  %s263_s12, 256, %s265_s15, [#allocation4], %s418_s17, %s418_s17, %s419_s18  }
 0x236   :  { %415 = dma.done.wait [#allocation4], 256  }
 0x237   :  { %416 = vsyncadd [#allocation4], 4294967040 }
 0x238   :  { %275 = vsyncpa [#allocation3], 1 }
 0x239   :  { %276 = vsyncpa [#allocation6], 1 }
 0x23a   :  { %277 = vsyncpa [#allocation4], 1 }

</bundles_post_ra>
